<compile_context>
chip_gen: v6e
topology: v6e:2x2x1
jax: 0.10.0
libtpu: 0.0.40
codegen_flags: <defaults>
</compile_context>

<pallas_src>
import jax
import jax.numpy as jnp
import numpy as np
from jax.experimental import pallas as pl
from jax.experimental.pallas import tpu as pltpu

HIDDEN = 512
LEAKY_SLOPE = 0.01  # PyTorch nn.LeakyReLU default negative_slope


def _orthogonal(key, rows, cols, gain):
    """Deterministic orthogonal init matching torch.nn.init.orthogonal_ semantics
    for a weight of shape (rows, cols)."""
    a = jax.random.normal(key, (rows, cols), dtype=jnp.float32)
    transpose = rows < cols
    if transpose:
        a = a.T
    q, r = jnp.linalg.qr(a)
    d = jnp.sign(jnp.diag(r))
    q = q * d[None, :]
    if transpose:
        q = q.T
    return gain * q  # shape (rows, cols)


def _mlp_kernel(x_ref, w1_ref, b1_ref, w2_ref, b2_ref, o_ref):
    # Layer 1: single K=(Ds+Da) MXU matmul, f32 accumulation.
    h = jnp.dot(x_ref[...], w1_ref[...], preferred_element_type=jnp.float32)
    # Epilogue kept strictly f32 (b1/w2 are f32) -> correct on v5e's f32-only VPU.
    h = h + b1_ref[...]                                # broadcast [1, 512]
    h = jnp.where(h > 0, h, LEAKY_SLOPE * h)           # LeakyReLU on the VPU

    # Layer 2 (out_features == 1): VPU multiply + XLU lane reduce against a
    # lane-dense [1, 512] w2 instead of a wasteful N=1 MXU matmul.
    y = jnp.sum(h * w2_ref[...], axis=-1, keepdims=True)          # [block_b, 1]
    # TODO(synk): for very large block_b a lane-dense (1, block_b) output slab
    # would avoid masked 1-lane stores; only worth it if writeback shows up in
    # profiles, so the simple [block_b, 1] column store is kept here.
    o_ref[...] = (y + b2_ref[0]).astype(o_ref.dtype)


def linear_action_value_forward(enc_state, action, params, *,
                                block_b=4096, compute_dtype=jnp.bfloat16):
    """Pallas forward. enc_state: [B, Ds], action: [B, Da]. Returns [B, 1].

    compute_dtype applies to the matmul operands only (x, W1); accumulation
    and the epilogue stay in float32. Pass compute_dtype=jnp.float32 for exact
    f32 parity with the PyTorch reference.
    """
    w1, b1, w2, b2 = params
    B, Ds = enc_state.shape
    Da = action.shape[1]
    D = Ds + Da

    # Concat once in the wrapper (tiny [B, D] copy) so layer 1 is ONE dot with
    # K = Ds + Da instead of two padded tiny-K dots.
    x = jnp.concatenate([enc_state, action], axis=1).astype(compute_dtype)
    w1_c = w1.astype(compute_dtype)

    # Batch tiling: align to 16 rows for bf16 sublane packing (8 also divides 16
    # so f32 is fine too). block_b capped so the [block_b, 512] f32 h temp plus
    # double-buffered x/out tiles stay well inside the 32 MiB scoped-VMEM
    # default on every TPU generation (4096*512*4 B = 8 MiB).
    align = 16
    b_pad_a = ((max(B, 1) + align - 1) // align) * align
    block_b = max(align, (min(block_b, b_pad_a) // align) * align)
    n_blocks = pl.cdiv(b_pad_a, block_b)
    # Megacore: if the whole (sufficiently large) batch landed in one block,
    # split it in two so ("parallel",) shards across v7x's 2 TensorCores.
    if n_blocks == 1 and b_pad_a >= 256:
        half = (b_pad_a + 1) // 2
        block_b = ((half + align - 1) // align) * align
        n_blocks = pl.cdiv(b_pad_a, block_b)
    b_pad = n_blocks * block_b
    if b_pad != B:
        x = jnp.pad(x, ((0, b_pad - B), (0, 0)))

    elem_bytes = jnp.dtype(compute_dtype).itemsize
    flops = 2 * b_pad * D * HIDDEN + 4 * b_pad * HIDDEN
    bytes_accessed = (b_pad * D * elem_bytes          # activations in
                      + D * HIDDEN * elem_bytes       # W1
                      + 2 * HIDDEN * 4 + 4            # b1, w2, b2
                      + b_pad * 4)                    # output

    out = pl.pallas_call(
        _mlp_kernel,
        out_shape=jax.ShapeDtypeStruct((b_pad, 1), jnp.float32),
        grid=(n_blocks,),
        in_specs=[
            pl.BlockSpec((block_b, D), lambda i: (i, 0)),       # x tile
            pl.BlockSpec((D, HIDDEN), lambda i: (0, 0)),        # W1 (resident)
            pl.BlockSpec((1, HIDDEN), lambda i: (0, 0)),        # b1 (resident, f32)
            pl.BlockSpec((1, HIDDEN), lambda i: (0, 0)),        # w2 lane-dense (f32)
            pl.BlockSpec(memory_space=pltpu.MemorySpace.SMEM),  # b2 scalar
        ],
        out_specs=pl.BlockSpec((block_b, 1), lambda i: (i, 0)),
        compiler_params=pltpu.CompilerParams(
            dimension_semantics=("parallel",),
        ),
        cost_estimate=pl.CostEstimate(
            flops=int(flops), transcendentals=0, bytes_accessed=int(bytes_accessed)),
    )(x, w1_c, b1, w2, b2)

    return out[:B]


def make_params(enc_dim, act_dim, key):
    """Deterministic params mirroring the module's __init__:
       orthogonal(gain=sqrt(2)) weights, zero biases.
       W1 is stored transposed as [D, 512] (x @ W layout); w2 stays [1, 512]."""
    k1, k2 = jax.random.split(key)
    gain = float(np.sqrt(2.0))
    input_dims = enc_dim + act_dim
    # PyTorch Linear weight shapes: (out_features, in_features).
    w1_t = _orthogonal(k1, HIDDEN, input_dims, gain)     # [512, D]
    w2_t = _orthogonal(k2, 1, HIDDEN, gain)              # [1, 512]
    w1 = jnp.asarray(w1_t.T, dtype=jnp.float32)          # [D, 512]
    b1 = jnp.zeros((1, HIDDEN), dtype=jnp.float32)
    w2 = jnp.asarray(w2_t, dtype=jnp.float32)            # [1, 512] lane-dense
    b2 = jnp.zeros((1,), dtype=jnp.float32)              # SMEM scalar
    return (w1, b1, w2, b2)


def reference_forward(enc_state, action, params):
    """Pure-JAX f32 reference for verification (matches the PyTorch module)."""
    w1, b1, w2, b2 = params
    x = jnp.concatenate([enc_state, action], axis=1).astype(jnp.float32)  # [B, D]
    h = x @ w1 + b1
    h = jnp.where(h > 0, h, LEAKY_SLOPE * h)
    return h @ w2.T + b2[None, :]                                         # [B, 1]


if __name__ == "__main__":
    key = jax.random.PRNGKey(0)
    k_enc, k_act, k_param = jax.random.split(key, 3)

    batch = 2
    enc_dim = 24
    act_dim = 8

    enc_state = jax.random.normal(k_enc, (batch, enc_dim), dtype=jnp.float32)
    action = jax.random.normal(k_act, (batch, act_dim), dtype=jnp.float32)
    params = make_params(enc_dim, act_dim, k_param)

    ref = reference_forward(enc_state, action, params)

    # Default (bf16 matmul operands, f32 accumulation/epilogue).
    out = linear_action_value_forward(enc_state, action, params)
    out = jax.block_until_ready(out)
    assert out.shape == (batch, 1)
    np.testing.assert_allclose(np.asarray(out), np.asarray(ref), rtol=5e-2, atol=5e-2)

    # Exact f32 path still matches tightly.
    out_f32 = linear_action_value_forward(enc_state, action, params,
                                          compute_dtype=jnp.float32)
    out_f32 = jax.block_until_ready(out_f32)
    np.testing.assert_allclose(np.asarray(out_f32), np.asarray(ref),
                               rtol=1e-5, atol=2e-5)

    print("KERNEL_OK")
</pallas_src>

<mosaic_0001>
module attributes {stable_mosaic.version = 11 : i64} {
  func.func @_mlp_kernel(%arg0: i32, %arg1: memref<16x32xbf16, #tpu.memory_space<vmem>>, %arg2: memref<32x512xbf16, #tpu.memory_space<vmem>>, %arg3: memref<1x512xf32, #tpu.memory_space<vmem>>, %arg4: memref<1x512xf32, #tpu.memory_space<vmem>>, %arg5: memref<1xf32, #tpu.memory_space<smem>>, %arg6: memref<16x1xf32, #tpu.memory_space<vmem>>) attributes {dimension_semantics = [#tpu.dimension_semantics<parallel>], iteration_bounds = array<i64: 1>, scalar_prefetch = 0 : i64, scratch_operands = 0 : i64, tpu.core_type = #tpu.core_type<tc>, window_params = [{transform_indices = @transform_0, window_bounds = array<i64: 16, 32>}, {pipeline_mode = #tpu.pipeline_mode<synchronous>, transform_indices = @transform_1, window_bounds = array<i64: 32, 512>}, {pipeline_mode = #tpu.pipeline_mode<synchronous>, transform_indices = @transform_2, window_bounds = array<i64: 1, 512>}, {pipeline_mode = #tpu.pipeline_mode<synchronous>, transform_indices = @transform_3, window_bounds = array<i64: 1, 512>}, {transform_indices = @transform_4, window_bounds = array<i64: 1>}, {transform_indices = @transform_5, window_bounds = array<i64: 16, 1>}]} {
    %c0 = arith.constant 0 : index
    %c0_0 = arith.constant 0 : index
    %0 = vector.load %arg1[%c0, %c0_0] : memref<16x32xbf16, #tpu.memory_space<vmem>>, vector<16x32xbf16>
    %c0_1 = arith.constant 0 : index
    %c0_2 = arith.constant 0 : index
    %1 = vector.load %arg2[%c0_1, %c0_2] : memref<32x512xbf16, #tpu.memory_space<vmem>>, vector<32x512xbf16>
    %cst = arith.constant dense<0.000000e+00> : vector<16x512xf32>
    %2 = tpu.matmul %0, %1, %cst {dimension_numbers = #tpu.dot_dimension_numbers<[1], [0], [0], [1], [0, 0, 1, 1], [], []>} : vector<16x32xbf16>, vector<32x512xbf16>, vector<16x512xf32> -> vector<16x512xf32>
    %c0_3 = arith.constant 0 : index
    %c0_4 = arith.constant 0 : index
    %3 = vector.load %arg3[%c0_3, %c0_4] : memref<1x512xf32, #tpu.memory_space<vmem>>, vector<1x512xf32>
    %4 = vector.broadcast %3 : vector<1x512xf32> to vector<16x512xf32>
    %5 = arith.addf %2, %4 : vector<16x512xf32>
    %cst_5 = arith.constant 0.000000e+00 : f32
    %6 = vector.broadcast %cst_5 : f32 to vector<16x512xf32>
    %7 = arith.cmpf ogt, %5, %6 : vector<16x512xf32>
    %cst_6 = arith.constant 0.00999999977 : f32
    %8 = vector.broadcast %cst_6 : f32 to vector<16x512xf32>
    %9 = arith.mulf %8, %5 : vector<16x512xf32>
    %10 = arith.select %7, %5, %9 : vector<16x512xi1>, vector<16x512xf32>
    %c0_7 = arith.constant 0 : index
    %c0_8 = arith.constant 0 : index
    %11 = vector.load %arg4[%c0_7, %c0_8] : memref<1x512xf32, #tpu.memory_space<vmem>>, vector<1x512xf32>
    %12 = vector.broadcast %11 : vector<1x512xf32> to vector<16x512xf32>
    %13 = arith.mulf %10, %12 : vector<16x512xf32>
    %cst_9 = arith.constant dense<0.000000e+00> : vector<16xf32>
    %14 = vector.multi_reduction <add>, %13, %cst_9 [1] : vector<16x512xf32> to vector<16xf32>
    %15 = vector.shape_cast %14 : vector<16xf32> to vector<16x1xf32>
    %c0_10 = arith.constant 0 : index
    %16 = memref.load %arg5[%c0_10] : memref<1xf32, #tpu.memory_space<smem>>
    %17 = vector.broadcast %16 : f32 to vector<16x1xf32>
    %18 = arith.addf %15, %17 : vector<16x1xf32>
    %c0_11 = arith.constant 0 : index
    %c0_12 = arith.constant 0 : index
    %19 = vector.load %arg6[%c0_11, %c0_12] : memref<16x1xf32, #tpu.memory_space<vmem>>, vector<16x1xf32>
    tpu.vector_store %arg6[%c0_11, %c0_12], %18 {strides = array<i32>} : memref<16x1xf32, #tpu.memory_space<vmem>>, vector<16x1xf32>,
    return
  }
  func.func @transform_0(%arg0: i32) -> (i32, i32) {
    %c0_i32 = arith.constant 0 : i32
    %c0_i32_0 = arith.constant 0 : i32
    return %arg0, %c0_i32 : i32, i32
  }
  func.func @transform_1(%arg0: i32) -> (i32, i32) {
    %c0_i32 = arith.constant 0 : i32
    %c0_i32_0 = arith.constant 0 : i32
    %c0_i32_1 = arith.constant 0 : i32
    return %c0_i32, %c0_i32_0 : i32, i32
  }
  func.func @transform_2(%arg0: i32) -> (i32, i32) {
    %c0_i32 = arith.constant 0 : i32
    %c0_i32_0 = arith.constant 0 : i32
    %c0_i32_1 = arith.constant 0 : i32
    return %c0_i32, %c0_i32_0 : i32, i32
  }
  func.func @transform_3(%arg0: i32) -> (i32, i32) {
    %c0_i32 = arith.constant 0 : i32
    %c0_i32_0 = arith.constant 0 : i32
    %c0_i32_1 = arith.constant 0 : i32
    return %c0_i32, %c0_i32_0 : i32, i32
  }
  func.func @transform_4(%arg0: i32) -> i32 {
    %c0_i32 = arith.constant 0 : i32
    %c0_i32_0 = arith.constant 0 : i32
    return %c0_i32 : i32
  }
  func.func @transform_5(%arg0: i32) -> (i32, i32) {
    %c0_i32 = arith.constant 0 : i32
    %c0_i32_0 = arith.constant 0 : i32
    return %arg0, %c0_i32 : i32, i32
  }
}

</mosaic_0001>

<bundles_post_ra>
// kernel: tpu_custom_call.1
= control target key start
LH: loop header
LB: loop body
LE: loop exit
PB: predicated region body
PF: predicated region fallthrough
CT: control target
= control target key end

     0   :  { %11 = vsyncpa [#allocation4], 0  ;;  %s461_s0 = inlined_call_operand.hbm [shape: bf16[16,32], index: 0, kind: input, shape index: {}]   ;;  %s462_s1 = inlined_call_operand.hbm [shape: bf16[32,512], index: 1, kind: input, shape index: {}]   ;;  %s463_s2 = inlined_call_operand.vmem [shape: f32[1,512], index: 2, kind: input, shape index: {}]   ;;  %s464_s3 = inlined_call_operand.hbm [shape: f32[1,512], index: 3, kind: input, shape index: {}]   ;;  %s465_s4 = inlined_call_operand.<no memory space> [shape: f32[1], index: 4, kind: input, shape index: {}]   ;;  %s466_s5 = inlined_call_operand.vmem [shape: f32[16,1], index: 5, kind: output, shape index: {}]  }
   0x1   :  { %12 = vsyncpa [#allocation6], 0  ;;  %s401_s18 = smov [#allocation5]  }
   0x2   :  { %s30_s19 = sshll.u32 %s401_s18, 4  ;;  %s31_s19 = int_to_ptr.vmem [resolvable:$true] %s30_s19 }
   0x3   :  { %s345_s20 = scalar_lea.vmem %s31_s19, 1024  ;;  %p350_p1 = scmp.lt.s32.totalorder %s31_s19, %s31_s19 }
   0x4   :  { %p346_p0 = scmp.ne.s32.totalorder %s31_s19, %s345_s20  ;;  %p351_p2 = scmp.lt.s32.totalorder %s345_s20, %s345_s20 }
   0x6   :  { %p352_p3 = por %p351_p2, %p350_p1 }
   0x8   :  { %p353_p4 = pnand %p352_p3, %p346_p0 }
   0xa   :  { %356 = shalt.err (!%p353_p4)
}
   0xb   :  { %s402_s21 = smov 256   ;;  %s403_s22 = smov 16  }
   0xc   :  { %36 = dma.hbm_to_vmem [thread:$0]  %s462_s1, 1024, %s31_s19, [#allocation6], %s402_s21, %s402_s21, %s403_s22  }
   0xd   :  { %s404_s25 = smov [#allocation3]  }
   0xe   :  { %s18_s26 = sshll.u32 %s404_s25, 4  ;;  %s19_s26 = int_to_ptr.vmem [resolvable:$true] %s18_s26 }
   0xf   :  { %s365_s27 = scalar_lea.vmem %s19_s26, 128  ;;  %p370_p6 = scmp.lt.s32.totalorder %s19_s26, %s19_s26 }
  0x10   :  { %p366_p5 = scmp.ne.s32.totalorder %s19_s26, %s365_s27  ;;  %p371_p7 = scmp.lt.s32.totalorder %s365_s27, %s365_s27 }
  0x12   :  { %p372_p8 = por %p371_p7, %p370_p6 }
  0x14   :  { %p373_p9 = pnand %p372_p8, %p366_p5 }
  0x16   :  { %376 = shalt.err (!%p373_p9)
}
  0x17   :  { %s405_s28 = smov 64   ;;  %s406_s29 = smov 4  }
  0x18   :  { %24 = dma.hbm_to_vmem [thread:$0]  %s461_s0, 128, %s19_s26, [#allocation4], %s405_s28, %s405_s28, %s406_s29  }
  0x19   :  { %s407_s7 = smov [#allocation7]  }
  0x1a   :  { %s45_s8 = sshll.u32 %s407_s7, 4  ;;  %s46_s8 = int_to_ptr.vmem [resolvable:$true] %s45_s8 }
  0x1b   :  { %s385_s1 = scalar_lea.vmem %s46_s8, 64  ;;  %p390_p11 = scmp.lt.s32.totalorder %s46_s8, %s46_s8 }
  0x1c   :  { %p386_p10 = scmp.ne.s32.totalorder %s46_s8, %s385_s1  ;;  %p391_p12 = scmp.lt.s32.totalorder %s385_s1, %s385_s1 }
  0x1e   :  { %p392_p13 = por %p391_p12, %p390_p11 }
  0x20   :  { %p393_p0 = pnand %p392_p13, %p386_p10 }
  0x22   :  { %396 = shalt.err (!%p393_p0)
}
  0x23   :  { %48 = dma.hbm_to_vmem [thread:$0]  %s464_s3, 64, %s46_s8, [#allocation6]  }
  0x24   :  { %397 = dma.done.wait [#allocation4], 128  }
  0x25   :  { %398 = vsyncadd [#allocation4], 4294967168 }
  0x26   :  { %399 = dma.done.wait [#allocation6], 1088  }
  0x27   :  { %400 = vsyncadd [#allocation6], 4294966208  ;;  %v408_v0 = vmov 0   ;;  %v324_v1 = vld [vmem:[#allocation5 + $0x24] ss:$16 sps:$4 sm:$0xff]   ;;  %v336_v9 = vld [vmem:[#allocation3] sm:$0xff]   ;;  %v73_v10 = vlaneseq }
  0x28   :  { %174 = vmatprep.mubr.bf16.mxu0 %v408_v0  ;;  %217 = vmatprep.mubr.bf16.mxu1 %v408_v0  ;;  %v326_v2 = vld [vmem:[#allocation5 + $0x2c] ss:$16 sps:$4 sm:$0xff]   ;;  %v328_v3 = vld [vmem:[#allocation5 + $0x20] ss:$16 sps:$4 sm:$0xff]   ;;  %v329_v4 = vld [vmem:[#allocation5 + $0x28] ss:$16 sps:$4 sm:$0xff]  }
  0x29   :  { %154 = vmatprep.subr.bf16.mxu0 %v324_v1  ;;  %197 = vmatprep.subr.bf16.mxu1 %v326_v2  ;;  %v330_v5 = vld [vmem:[#allocation5 + $0x4] ss:$16 sps:$4 sm:$0xff]   ;;  %v332_v6 = vld [vmem:[#allocation5 + $0xc] ss:$16 sps:$4 sm:$0xff]   ;;  %v334_v7 = vld [vmem:[#allocation5] ss:$16 sps:$4 sm:$0xff]  }
  0x2a   :  { %155 = vmatpush1.bf16.msra.mxu0 %v328_v3  ;;  %198 = vmatpush1.bf16.msra.mxu1 %v329_v4  ;;  %v335_v8 = vld [vmem:[#allocation5 + $0x8] ss:$16 sps:$4 sm:$0xff]   ;;  %vm138_vm0 = vcmask 261120   ;;  %v74_v11 = vshrl.u32 %v73_v10, 7  ;;  %v252_v24 = vld [vmem:[#allocation7] sm:$0xf] }
  0x2b   :  { %156 = vmatprep.subr.bf16.mxu0 %v330_v5  ;;  %199 = vmatprep.subr.bf16.mxu1 %v332_v6  ;;  %v71_v14 = vld [vmem:[%s463_s2] sm:$0xf]  ;;  %vm296_vm9 = vcmask 7168  }
  0x2c   :  { %v75_v12 = vsub.s32 0, %v74_v11  ;;  %v83_v13 = vsub.s32 2, %v74_v11  ;;  %v79_v15 = vsub.s32 1, %v74_v11  ;;  %v87_v16 = vsub.s32 3, %v74_v11 }
  0x2e   :  { %157 = vmatpush1.bf16.msra.mxu0 %v334_v7  ;;  %200 = vmatpush1.bf16.msra.mxu1 %v335_v8  ;;  %v76_v17 = vrot.slane %v71_v14, %v75_v12  ;;  %v84_v18 = vrot.slane %v71_v14, %v83_v13  ;;  %v80_v21 = vrot.slane %v71_v14, %v79_v15  ;;  %v293_v8 = vstv %s465_s4 }
  0x2f   :  { %v88_v22 = vrot.slane %v71_v14, %v87_v16  ;;  %v257_v30 = vrot.slane %v252_v24, %v75_v12  ;;  %v261_v35 = vrot.slane %v252_v24, %v79_v15  ;;  %v265_v38 = vrot.slane %v252_v24, %v83_v13 }
  0x30   :  { %v269_v50 = vrot.slane %v252_v24, %v87_v16 }
  0x31   :  { %314 = vmatmul.mubr.msk.bf16.vlgmr.msra.gmra.mxu0 %vm138_vm0, %v336_v9  ;;  %315 = vmatmul.mubr.msk.bf16.vlgmr.msra.gmra.mxu1 %vm138_vm0, %v336_v9 }
  0xf1   :  { %v176_v19 = vpop.f32.mrf.mxu0  ;;  %v219_v20 = vpop.f32.mrf.mxu1 }
  0xf2   :  { %v177_v23 = vadd.f32 %v176_v19, %v76_v17  ;;  %v220_v25 = vadd.f32 %v219_v20, %v84_v18 }
  0xf3   :  { %v178_v26 = vpop.f32.mrf.mxu0  ;;  %v221_v27 = vpop.f32.mrf.mxu1 }
  0xf4   :  { %vm228_vm1 = vcmp.gt.f32.partialorder %v177_v23, 0.0  ;;  %v236_v28 = vmul.f32 0.01, %v177_v23  ;;  %v238_v29 = vmul.f32 0.01, %v220_v25  ;;  %vm230_vm2 = vcmp.gt.f32.partialorder %v220_v25, 0.0 }
  0xf5   :  { %v179_v31 = vadd.f32 %v178_v26, %v80_v21  ;;  %v222_v32 = vadd.f32 %v221_v27, %v88_v22  ;;  %v180_v33 = vpop.f32.mrf.mxu0  ;;  %v223_v34 = vpop.f32.mrf.mxu1 }
  0xf6   :  { %v181_v36 = vadd.f32 %v180_v33, %v76_v17  ;;  %v224_v37 = vadd.f32 %v223_v34, %v84_v18  ;;  %v244_v39 = vsel %vm228_vm1, %v177_v23, %v236_v28  ;;  %v246_v45 = vsel %vm230_vm2, %v220_v25, %v238_v29 }
  0xf7   :  { %vm229_vm3 = vcmp.gt.f32.partialorder %v179_v31, 0.0  ;;  %v237_v40 = vmul.f32 0.01, %v179_v31  ;;  %v239_v41 = vmul.f32 0.01, %v222_v32  ;;  %v182_v42 = vpop.f32.mrf.mxu0  ;;  %v225_v43 = vpop.f32.mrf.mxu1  ;;  %vm231_vm4 = vcmp.gt.f32.partialorder %v222_v32, 0.0 }
  0xf8   :  { %vm232_vm5 = vcmp.gt.f32.partialorder %v181_v36, 0.0  ;;  %v240_v44 = vmul.f32 0.01, %v181_v36  ;;  %v242_v47 = vmul.f32 0.01, %v224_v37  ;;  %v183_v48 = vadd.f32 %v182_v42, %v80_v21 }
  0xf9   :  { %v245_v46 = vsel %vm229_vm3, %v179_v31, %v237_v40  ;;  %v226_v49 = vadd.f32 %v225_v43, %v88_v22  ;;  %vm234_vm6 = vcmp.gt.f32.partialorder %v224_v37, 0.0  ;;  %v274_v51 = vmul.f32 %v257_v30, %v244_v39 }
  0xfa   :  { %v275_v52 = vmul.f32 %v261_v35, %v245_v46  ;;  %v248_v53 = vsel %vm232_vm5, %v181_v36, %v240_v44  ;;  %vm233_vm7 = vcmp.gt.f32.partialorder %v183_v48, 0.0  ;;  %v241_v54 = vmul.f32 0.01, %v183_v48 }
  0xfb   :  { %v247_v55 = vsel %vm231_vm4, %v222_v32, %v239_v41  ;;  %vm235_vm8 = vcmp.gt.f32.partialorder %v226_v49, 0.0  ;;  %v243_v56 = vmul.f32 0.01, %v226_v49  ;;  %v276_v57 = vmul.f32 %v265_v38, %v246_v45 }
  0xfc   :  { %v282_v58 = vadd.f32 %v275_v52, %v274_v51  ;;  %v250_v59 = vsel %vm234_vm6, %v224_v37, %v242_v47  ;;  %v249_v60 = vsel %vm233_vm7, %v183_v48, %v241_v54  ;;  %v278_v61 = vmul.f32 %v257_v30, %v248_v53 }
  0xfd   :  { %v279_v62 = vmul.f32 %v261_v35, %v249_v60  ;;  %v277_v63 = vmul.f32 %v269_v50, %v247_v55  ;;  %v251_v1 = vsel %vm235_vm8, %v226_v49, %v243_v56  ;;  %v280_v3 = vmul.f32 %v265_v38, %v250_v59 }
  0xfe   :  { %v283_v0 = vadd.f32 %v282_v58, %v276_v57  ;;  %v281_v5 = vmul.f32 %v269_v50, %v251_v1 }
  0xff   :  { %v287_v4 = vadd.f32 %v279_v62, %v278_v61 }
 0x100   :  { %v284_v2 = vadd.f32 %v283_v0, %v277_v63 }
 0x101   :  { %v288_v6 = vadd.f32 %v287_v4, %v280_v3 }
 0x102   :  { %285 = vadd.xlane.f32.xlu0 %v284_v2 }
 0x103   :  { %v289_v7 = vadd.f32 %v288_v6, %v281_v5 }
 0x106   :  { %290 = vadd.xlane.f32.xlu0 %v289_v7 }
 0x18b   :  { %v286_v9 = vpop.xlane.xlu0 %285 }
 0x18c   :  { %v294_v10 = vadd.f32 %v293_v8, %v286_v9 }
 0x18e   :  { %297 = vst.msk [vmem:[%s466_s5] sm:$0xff] %vm296_vm9, %v294_v10 }
 0x18f   :  { %v291_v11 = vpop.xlane.xlu0 %290 }
 0x190   :  { %v295_v12 = vadd.f32 %v293_v8, %v291_v11 }
 0x192   :  { %298 = vst.msk [vmem:[%s466_s5 + $0x8] sm:$0xff] %vm296_vm9, %v295_v12 }
 0x193   :  { %303 = vsyncpa [#allocation4], 1 }
 0x194   :  { %304 = vsyncpa [#allocation6], 1 }

</bundles_post_ra>
